<compile_context>
chip_gen: v5e
topology: v5e:2x2
jax: 0.10.0
libtpu: 0.0.40
codegen_flags: <defaults>
</compile_context>

<pallas_src>
import jax
import jax.numpy as jnp
from jax.experimental import pallas as pl
from jax.experimental.pallas import tpu as pltpu


def _round_up(x: int, m: int) -> int:
    return ((x + m - 1) // m) * m


def _patch_embed_kernel(x_ref, w_ref, b_ref, o_ref):
    # x_ref: (TM, K) bf16 patch tile, w_ref: (K, Dp) bf16 (resident),
    # b_ref: (1, Dp) f32 bias (resident), o_ref: (TM, Dp) f32 output tile.
    acc = jnp.dot(x_ref[...], w_ref[...], preferred_element_type=jnp.float32)
    o_ref[...] = (acc + b_ref[...]).astype(o_ref.dtype)


def patch_embeddings(x, weight, bias, patch_size, *, tm_target=256):
    """x: (B, 3, H, W); weight: (D, 3, P, P); bias: (D,)  ->  (B, N, D) float32."""
    B, C, H, W = x.shape
    D = weight.shape[0]
    P = patch_size
    nh, nw = H // P, W // P
    N = nh * nw
    K = C * P * P
    M = B * N

    # ---- glue: patchify in the wrapper (channel-major C,P,P flatten matches
    #      torch Conv2d weight.reshape(D, C*P*P)).  Cast to bf16 *before* the
    #      transpose so the extra HBM pass and the matmul inputs move half the
    #      bytes.
    # TODO(synk): fold patchify into the kernel via a multi-dim BlockSpec so the
    #             6-D transpose runs on the VMEM tile (idle XLU) instead of as a
    #             separate HBM->HBM pass.
    xb = x.astype(jnp.bfloat16)
    patches = xb.reshape(B, C, nh, P, nw, P)
    patches = patches.transpose(0, 2, 4, 1, 3, 5).reshape(M, K)

    # Conv2d with stride == kernel is a matmul against weight flattened (D, K).
    w_mat = weight.reshape(D, K).T.astype(jnp.bfloat16)    # (K, D)
    b_mat = bias.astype(jnp.float32).reshape(1, D)          # (1, D)

    # ---- lane/sublane friendly padding ----
    Dp = _round_up(D, 128)                    # lane-dense output tiles
    TM = min(tm_target, _round_up(M, 8))      # sublane-aligned M tile
    Mp = _round_up(M, TM)

    if Dp != D:
        w_mat = jnp.pad(w_mat, ((0, 0), (0, Dp - D)))
        b_mat = jnp.pad(b_mat, ((0, 0), (0, Dp - D)))
    if Mp != M:
        patches = jnp.pad(patches, ((0, Mp - M), (0, 0)))

    grid = (Mp // TM,)
    flops = 2 * Mp * K * Dp
    bytes_accessed = (patches.size * 2 +      # bf16 patches
                      w_mat.size * 2 +        # bf16 weight
                      b_mat.size * 4 +        # f32 bias
                      Mp * Dp * 4)            # f32 output

    out = pl.pallas_call(
        _patch_embed_kernel,
        out_shape=jax.ShapeDtypeStruct((Mp, Dp), jnp.float32),
        grid=grid,
        in_specs=[
            pl.BlockSpec((TM, K), lambda i: (i, 0)),   # streamed patch tile
            pl.BlockSpec((K, Dp), lambda i: (0, 0)),   # resident weight
            pl.BlockSpec((1, Dp), lambda i: (0, 0)),   # resident bias
        ],
        out_specs=pl.BlockSpec((TM, Dp), lambda i: (i, 0)),
        compiler_params=pltpu.CompilerParams(
            dimension_semantics=("parallel",)),
        cost_estimate=pl.CostEstimate(
            flops=flops, transcendentals=0, bytes_accessed=bytes_accessed),
    )(patches, w_mat, b_mat)

    return out[:M, :D].reshape(B, N, D)


if __name__ == "__main__":
    # config: image_size=16, patch_size=4, hidden_size=32  -> num_patches=16
    image_size = 16
    patch_size = 4
    hidden_size = 32
    batch = 2
    in_channels = 3

    key = jax.random.PRNGKey(0)
    kx, kw, kb = jax.random.split(key, 3)

    x = jax.random.normal(kx, (batch, in_channels, image_size, image_size),
                          dtype=jnp.float32)
    # deterministic Conv2d-shaped params: weight (D, 3, P, P), bias (D,)
    fan_in = in_channels * patch_size * patch_size
    bound = 1.0 / (fan_in ** 0.5)
    weight = jax.random.uniform(kw, (hidden_size, in_channels, patch_size, patch_size),
                                minval=-bound, maxval=bound, dtype=jnp.float32)
    bias = jax.random.uniform(kb, (hidden_size,),
                              minval=-bound, maxval=bound, dtype=jnp.float32)

    out = patch_embeddings(x, weight, bias, patch_size)
    out = jax.block_until_ready(out)

    # reference check with plain-JAX f32 conv (strided conv == patch matmul).
    # Tolerance is loosened because kernel inputs are bf16 (accumulation f32).
    ref = jax.lax.conv_general_dilated(
        x, weight, window_strides=(patch_size, patch_size), padding="VALID",
        dimension_numbers=("NCHW", "OIHW", "NCHW"))
    ref = ref + bias[None, :, None, None]
    ref = ref.reshape(batch, hidden_size, -1).transpose(0, 2, 1)
    assert out.shape == (batch, (image_size // patch_size) ** 2, hidden_size)
    assert jnp.allclose(out, ref, atol=2e-2, rtol=2e-2)

    print("KERNEL_OK")
</pallas_src>

<mosaic_0001>
module attributes {stable_mosaic.version = 11 : i64} {
  func.func @_patch_embed_kernel(%arg0: i32, %arg1: memref<32x48xbf16, #tpu.memory_space<vmem>>, %arg2: memref<48x128xbf16, #tpu.memory_space<vmem>>, %arg3: memref<1x128xf32, #tpu.memory_space<vmem>>, %arg4: memref<32x128xf32, #tpu.memory_space<vmem>>) attributes {dimension_semantics = [#tpu.dimension_semantics<parallel>], iteration_bounds = array<i64: 1>, scalar_prefetch = 0 : i64, scratch_operands = 0 : i64, tpu.core_type = #tpu.core_type<tc>, window_params = [{transform_indices = @transform_0, window_bounds = array<i64: 32, 48>}, {pipeline_mode = #tpu.pipeline_mode<synchronous>, transform_indices = @transform_1, window_bounds = array<i64: 48, 128>}, {pipeline_mode = #tpu.pipeline_mode<synchronous>, transform_indices = @transform_2, window_bounds = array<i64: 1, 128>}, {transform_indices = @transform_3, window_bounds = array<i64: 32, 128>}]} {
    %c0 = arith.constant 0 : index
    %c0_0 = arith.constant 0 : index
    %0 = vector.load %arg1[%c0, %c0_0] : memref<32x48xbf16, #tpu.memory_space<vmem>>, vector<32x48xbf16>
    %c0_1 = arith.constant 0 : index
    %c0_2 = arith.constant 0 : index
    %1 = vector.load %arg2[%c0_1, %c0_2] : memref<48x128xbf16, #tpu.memory_space<vmem>>, vector<48x128xbf16>
    %cst = arith.constant dense<0.000000e+00> : vector<32x128xf32>
    %2 = tpu.matmul %0, %1, %cst {dimension_numbers = #tpu.dot_dimension_numbers<[1], [0], [0], [1], [0, 0, 1, 1], [], []>} : vector<32x48xbf16>, vector<48x128xbf16>, vector<32x128xf32> -> vector<32x128xf32>
    %c0_3 = arith.constant 0 : index
    %c0_4 = arith.constant 0 : index
    %3 = vector.load %arg3[%c0_3, %c0_4] : memref<1x128xf32, #tpu.memory_space<vmem>>, vector<1x128xf32>
    %4 = vector.broadcast %3 : vector<1x128xf32> to vector<32x128xf32>
    %5 = arith.addf %2, %4 : vector<32x128xf32>
    %c0_5 = arith.constant 0 : index
    %c0_6 = arith.constant 0 : index
    %6 = vector.load %arg4[%c0_5, %c0_6] : memref<32x128xf32, #tpu.memory_space<vmem>>, vector<32x128xf32>
    tpu.vector_store %arg4[%c0_5, %c0_6], %5 {strides = array<i32>} : memref<32x128xf32, #tpu.memory_space<vmem>>, vector<32x128xf32>,
    return
  }
  func.func @transform_0(%arg0: i32) -> (i32, i32) {
    %c0_i32 = arith.constant 0 : i32
    %c0_i32_0 = arith.constant 0 : i32
    return %arg0, %c0_i32 : i32, i32
  }
  func.func @transform_1(%arg0: i32) -> (i32, i32) {
    %c0_i32 = arith.constant 0 : i32
    %c0_i32_0 = arith.constant 0 : i32
    %c0_i32_1 = arith.constant 0 : i32
    return %c0_i32, %c0_i32_0 : i32, i32
  }
  func.func @transform_2(%arg0: i32) -> (i32, i32) {
    %c0_i32 = arith.constant 0 : i32
    %c0_i32_0 = arith.constant 0 : i32
    %c0_i32_1 = arith.constant 0 : i32
    return %c0_i32, %c0_i32_0 : i32, i32
  }
  func.func @transform_3(%arg0: i32) -> (i32, i32) {
    %c0_i32 = arith.constant 0 : i32
    %c0_i32_0 = arith.constant 0 : i32
    return %arg0, %c0_i32 : i32, i32
  }
}

</mosaic_0001>

<bundles_post_ra>
// kernel: tpu_custom_call.1
= control target key start
LH: loop header
LB: loop body
LE: loop exit
PB: predicated region body
PF: predicated region fallthrough
CT: control target
= control target key end

     0   :  { %8 = vsyncpa [#allocation3], 0  ;;  %s295_s0 = inlined_call_operand.hbm [shape: bf16[32,48], index: 0, kind: input, shape index: {}]   ;;  %s296_s1 = inlined_call_operand.hbm [shape: bf16[48,128], index: 1, kind: input, shape index: {}]   ;;  %s297_s2 = inlined_call_operand.vmem [shape: f32[1,128], index: 2, kind: input, shape index: {}]   ;;  %s298_s3 = inlined_call_operand.hbm [shape: f32[32,128], index: 3, kind: output, shape index: {}]  }
   0x1   :  { %9 = vsyncpa [#allocation6], 0 }
   0x2   :  { %10 = vsyncpa [#allocation4], 0  ;;  %s15_s14 = sshll.u32 %s295_s0, 4  ;;  %s256_s15 = smov [#allocation2]   ;;  %s16_s14 = int_to_ptr.hbm [resolvable:$true] %s15_s14 }
   0x3   :  { %s17_s16 = sshll.u32 %s256_s15, 4  ;;  %s28_s19 = sshll.u32 %s296_s1, 4  ;;  %s18_s16 = int_to_ptr.vmem [resolvable:$true] %s17_s16  ;;  %s29_s19 = int_to_ptr.hbm [resolvable:$true] %s28_s19 }
   0x4   :  { %s257_s20 = smov 64   ;;  %s258_s21 = smov 4  }
   0x5   :  { %23 = dma.hbm_to_vmem [thread:$0]  %s16_s14, 256, %s18_s16, [#allocation3], %s257_s20, %s257_s20, %s258_s21  }
   0x6   :  { %s259_s22 = smov [#allocation5]  }
   0x7   :  { %s30_s23 = sshll.u32 %s259_s22, 4  ;;  %s31_s23 = int_to_ptr.vmem [resolvable:$true] %s30_s23 }
   0x8   :  { %36 = dma.hbm_to_vmem [thread:$0]  %s29_s19, 384, %s31_s23, [#allocation6], %s257_s20, %s257_s20, %s258_s21  }
   0x9   :  { %250 = dma.done.wait [#allocation3], 256  }
   0xa   :  { %251 = vsyncadd [#allocation3], 4294967040 }
   0xb   :  { %252 = dma.done.wait [#allocation6], 384  }
   0xc   :  { %253 = vsyncadd [#allocation6], 4294966912  ;;  %v166_v0 = vld [vmem:[#allocation5 + $0x10] sm:$0xff]  ;;  %v165_v1 = vld [vmem:[#allocation5 + $0x8] sm:$0xff]  ;;  %vm90_vm0 = vcmask 392192   ;;  %s260_s24 = smov [#allocation7]  }
   0xd   :  { %102 = vmatpush.bf16.msra.mxu0 %v166_v0  ;;  %167 = vmatpush.bf16.msra.mxu1 %v166_v0  ;;  %v164_v2 = vld [vmem:[#allocation5] sm:$0xff]  ;;  %v162_v3 = vld [vmem:[#allocation2] sm:$0xff]  ;;  %v163_v4 = vld [vmem:[#allocation2 + $0x8] sm:$0xff]  ;;  %s124_s25 = sshll.u32 %s260_s24, 4  ;;  %s126_s28 = sshll.u32 %s298_s3, 4  ;;  %s125_s25 = int_to_ptr.vmem [resolvable:$true] %s124_s25  ;;  %s127_s28 = int_to_ptr.hbm [resolvable:$true] %s126_s28 }
   0xe   :  { %v177_v5 = vld [vmem:[%s297_s2] ss:$0 sm:$0xff]  ;;  %s261_s2 = smov 128   ;;  %s262_s29 = smov 8  }
  0x11   :  { %103 = vmatpush.bf16.msra.mxu0 %v165_v1  ;;  %168 = vmatpush.bf16.msra.mxu1 %v165_v1 }
  0x15   :  { %104 = vmatpush.bf16.msra.mxu0 %v164_v2  ;;  %169 = vmatpush.bf16.msra.mxu1 %v164_v2 }
  0x18   :  { %160 = vmatmul.msk.bf16.vlgmr.msra.gmra.mxu0 %vm90_vm0, %v162_v3  ;;  %161 = vmatmul.msk.bf16.vlgmr.msra.gmra.mxu1 %vm90_vm0, %v163_v4 }
  0x95   :  { %v106_v6 = vpop.f32.mrf.mxu0  ;;  %v111_v7 = vpop.f32.mrf.mxu1 }
  0x96   :  { %v107_v8 = vadd.f32 %v177_v5, %v106_v6  ;;  %v112_v9 = vadd.f32 %v177_v5, %v111_v7 }
  0x98   :  { %116 = vst [vmem:[#allocation7] sm:$0xff] %v107_v8 }
  0x99   :  { %118 = vst [vmem:[#allocation7 + $0x10] sm:$0xff] %v112_v9 }
  0x9d   :  { %v108_v10 = vpop.f32.mrf.mxu0  ;;  %v113_v11 = vpop.f32.mrf.mxu1 }
  0x9e   :  { %v109_v12 = vadd.f32 %v177_v5, %v108_v10  ;;  %v114_v13 = vadd.f32 %v177_v5, %v113_v11 }
  0xa0   :  { %117 = vst [vmem:[#allocation7 + $0x8] sm:$0xff] %v109_v12 }
  0xa1   :  { %119 = vst [vmem:[#allocation7 + $0x18] sm:$0xff] %v114_v13 }
  0xa2   :  { %132 = dma.vmem_to_hbm [thread:$0]  %s125_s25, 512, %s127_s28, [#allocation4], %s261_s2, %s261_s2, %s262_s29  }
  0xa3   :  { %254 = dma.done.wait [#allocation4], 512  }
  0xa4   :  { %255 = vsyncadd [#allocation4], 4294966784 }
  0xa5   :  { %137 = vsyncpa [#allocation3], 1 }
  0xa6   :  { %138 = vsyncpa [#allocation6], 1 }
  0xa7   :  { %139 = vsyncpa [#allocation4], 1 }

</bundles_post_ra>
